<compile_context>
chip_gen: v5e
topology: v5e:2x2
jax: 0.10.0
libtpu: 0.0.40
codegen_flags: <defaults>
</compile_context>

<pallas_src>
import jax
import jax.numpy as jnp
from jax.experimental import pallas as pl
from jax.experimental.pallas import tpu as pltpu

EPS = 1e-5           # InstanceNorm2d default eps
NEG_SLOPE = 0.2      # LeakyReLU slope


# ---------------------------------------------------------------------------
# Pallas kernel
#   grid = (N, 2, n_tiles); axis 1 is the phase axis.
#     phase 0 : conv matmul for HW tile t, accumulate per-channel sum / sumsq,
#               stash the pre-norm tile (bf16).
#     phase 1 : per-tile normalize + LeakyReLU + store a (Cout, tile_hw) block.
#
#   p_ref   : (K, tile_hw)               bf16 patches tile (pinned in phase 1)
#   w_ref   : (C_pad, K)                 bf16 conv weight (constant index -> resident)
#   o_ref   : (Cout, tile_hw)            f32 output tile
#   y_stash : (n_tiles, C_pad, tile_hw)  bf16 whole-sample pre-norm conv result
#   s_acc   : (C_pad, 1)                 f32 per-channel sum
#   ss_acc  : (C_pad, 1)                 f32 per-channel sum of squares
# ---------------------------------------------------------------------------
def unet_down_kernel(p_ref, w_ref, o_ref, y_stash, s_acc, ss_acc):
    ph = pl.program_id(1)
    t = pl.program_id(2)
    cout = o_ref.shape[0]
    hw = y_stash.shape[0] * y_stash.shape[2]

    @pl.when((ph == 0) & (t == 0))
    def _():
        s_acc[...] = jnp.zeros_like(s_acc)
        ss_acc[...] = jnp.zeros_like(ss_acc)

    @pl.when(ph == 0)
    def _():
        # bf16 x bf16 -> f32 on the MXU, natively in (C, HW) orientation.
        y = jnp.dot(w_ref[...], p_ref[...], preferred_element_type=jnp.float32)
        s_acc[...] += jnp.sum(y, axis=1, keepdims=True)
        ss_acc[...] += jnp.sum(y * y, axis=1, keepdims=True)
        y_stash[t] = y.astype(y_stash.dtype)

    @pl.when(ph == 1)
    def _():
        # TODO(synk): single-pass E[y^2]-mean^2 can lose precision vs. a
        #             two-pass/Welford form when |mean| >> std over large HW.
        inv_hw = 1.0 / hw
        mean = s_acc[...] * inv_hw                               # (C_pad, 1)
        var = jnp.maximum(ss_acc[...] * inv_hw - mean * mean, 0.0)
        scale = jax.lax.rsqrt(var + EPS)
        y = y_stash[t].astype(jnp.float32)                       # (C_pad, tile_hw)
        yn = (y - mean) * scale
        act = jnp.where(yn >= 0, yn, NEG_SLOPE * yn)
        # Drop the (exactly zero) Cout padding rows; they never reach HBM.
        o_ref[...] = act[:cout, :].astype(o_ref.dtype)


# ---------------------------------------------------------------------------
# Glue: im2col for conv(k=4, stride=2, pad=1) and the pallas_call wrapper
# ---------------------------------------------------------------------------
def _round_up(v, m):
    return (v + m - 1) // m * m


def _pick_tile_hw(hw, k_dim, c_pad, vmem_budget_bytes=40 * 1024 * 1024):
    """Largest lane-dense HW tile that divides HW and fits the VMEM budget."""
    if hw % 128 != 0:
        return hw                           # single full-extent tile (legal block)

    def vmem_bytes(t):
        return (2 * k_dim * t * 2           # patch tile, double-buffered, bf16
                + 2 * c_pad * k_dim * 2     # weight (assume double-buffered), bf16
                + c_pad * hw * 2            # bf16 whole-sample stash
                + 2 * c_pad * t * 4         # output tile, double-buffered, f32
                + 2 * c_pad * 4)            # stats

    cands = [t for t in range(128, min(hw, 2048) + 1, 128) if hw % t == 0]
    best = None
    for t in sorted(cands, key=lambda v: (v % 256 == 0, v)):    # prefer x256, bigger
        if vmem_bytes(t) <= vmem_budget_bytes:
            best = t
    if best is None:
        # TODO(synk): for very large HW the stash alone exceeds the budget —
        #             fall back to a two-pass (stats pass, normalize pass) scheme.
        best = cands[0]
    return best


def _im2col_ck(x, k=4, stride=2, pad=1):
    """x: (N, C, H, W) -> (N, C*k*k, Ho*Wo) bf16 patches, K ordered (c, kh, kw).

    Built directly in the (K, HW) orientation the kernel consumes — no trailing
    transpose.
    # TODO(synk): fuse this gather into the kernel (strided DMA / k*k shifted
    #             matmuls from an HBM-resident x) to remove the k^2/stride^2 = 4x
    #             input-read inflation of a materialized im2col.
    """
    n, c, h, w = x.shape
    ho = (h + 2 * pad - k) // stride + 1
    wo = (w + 2 * pad - k) // stride + 1
    xp = jnp.pad(x.astype(jnp.bfloat16), ((0, 0), (0, 0), (pad, pad), (pad, pad)))
    cols = []
    for kh in range(k):
        for kw in range(k):
            cols.append(xp[:, :, kh:kh + stride * ho:stride,
                              kw:kw + stride * wo:stride])       # (N, C, Ho, Wo)
    p = jnp.stack(cols, axis=2)                                  # (N, C, k*k, Ho, Wo)
    return p.reshape(n, c * k * k, ho * wo), ho, wo              # (N, K, HW)


def unet_down(x, weight, *, tile_hw=None):
    """UNetDown default forward: Conv2d(4,2,1,bias=False) -> InstanceNorm2d ->
    LeakyReLU(0.2).   x: (N, Cin, H, W) f32; weight: (Cout, Cin, 4, 4) f32."""
    n, cin, h, w = x.shape
    cout = weight.shape[0]
    assert weight.shape == (cout, cin, 4, 4)

    patches, ho, wo = _im2col_ck(x)                              # (N, K, HW) bf16
    k_dim, hw = patches.shape[1], patches.shape[2]

    # Pad Cout only to the bf16 sublane tile (16); K is NOT padded (Cin*16 is
    # always a multiple of 16 and equals the full block extent).
    c_pad = max(_round_up(cout, 16), 16)
    w_mat = weight.reshape(cout, cin * 16).astype(jnp.bfloat16)  # (Cout, K)
    w_mat = jnp.pad(w_mat, ((0, c_pad - cout), (0, 0)))          # (C_pad, K)

    if tile_hw is None:
        tile_hw = _pick_tile_hw(hw, k_dim, c_pad)
    assert hw % tile_hw == 0, "tile_hw must divide Ho*Wo"
    assert tile_hw == hw or tile_hw % 128 == 0, "tile_hw must be lane-dense"
    n_tiles = hw // tile_hw

    grid = (n, 2, n_tiles)                                       # (sample, phase, HW tile)

    # Phase 0: walk HW tiles.  Phase 1: pin patches to the last tile (already
    # resident -> no re-fetch) and walk output tiles instead.
    patch_idx = lambda b, ph, t: (b, 0, t * (1 - ph) + ph * (n_tiles - 1))
    out_idx = lambda b, ph, t: (b, 0, t * ph)

    out = pl.pallas_call(
        unet_down_kernel,
        out_shape=jax.ShapeDtypeStruct((n, cout, hw), jnp.float32),
        grid_spec=pltpu.PrefetchScalarGridSpec(
            num_scalar_prefetch=0,
            grid=grid,
            in_specs=[
                pl.BlockSpec((None, k_dim, tile_hw), patch_idx),
                # Constant index_map -> weight DMA'd once, VMEM-resident.
                # TODO(synk): pipeline_mode=pl.Buffered(1) would also reclaim the
                #             unused second weight buffer (~8 MiB at Cin=Cout=512).
                pl.BlockSpec((c_pad, k_dim), lambda b, ph, t: (0, 0)),
            ],
            out_specs=pl.BlockSpec((None, cout, tile_hw), out_idx),
            scratch_shapes=[
                pltpu.VMEM((n_tiles, c_pad, tile_hw), jnp.bfloat16),  # pre-norm stash
                pltpu.VMEM((c_pad, 1), jnp.float32),                  # per-channel sum
                pltpu.VMEM((c_pad, 1), jnp.float32),                  # per-channel sum(y^2)
            ]),
        compiler_params=pltpu.CompilerParams(
            # TODO(synk): for N == 1 on v7x, shard the HW-tile axis across the
            #             two TensorCores (partial stats + small combine).
            dimension_semantics=("parallel", "arbitrary", "arbitrary"),
            vmem_limit_bytes=48 * 1024 * 1024),
    )(patches, w_mat)

    # (N, Cout, HW) -> (N, Cout, Ho, Wo): contiguous reshape, no transpose.
    return out.reshape(n, cout, ho, wo)


# ---------------------------------------------------------------------------
# Pure-JAX reference (f32) for a numeric sanity check
# ---------------------------------------------------------------------------
def unet_down_ref(x, weight):
    y = jax.lax.conv_general_dilated(
        x, weight, window_strides=(2, 2), padding=((1, 1), (1, 1)),
        dimension_numbers=("NCHW", "OIHW", "NCHW"))
    mean = jnp.mean(y, axis=(2, 3), keepdims=True)
    var = jnp.mean((y - mean) ** 2, axis=(2, 3), keepdims=True)
    yn = (y - mean) * jax.lax.rsqrt(var + EPS)
    return jnp.where(yn >= 0, yn, NEG_SLOPE * yn)


if __name__ == "__main__":
    # UNetDown(in_size=4, out_size=8) defaults: normalize=True, dropout=0.0,
    # use_attention=False -> conv + instance-norm + leaky-relu only.
    key = jax.random.PRNGKey(0)
    kx, kw = jax.random.split(key)

    N, CIN, COUT, H, W = 2, 4, 8, 32, 32
    x = jax.random.normal(kx, (N, CIN, H, W), dtype=jnp.float32)
    # deterministic synthetic conv weight (torch layout: (out, in, kh, kw))
    weight = jax.random.normal(kw, (COUT, CIN, 4, 4), dtype=jnp.float32) * 0.1

    # tile_hw=128 -> 2 HW tiles per sample: exercises multi-tile stats
    # accumulation plus the tiled phase-1 normalize/store path.
    out = unet_down(x, weight, tile_hw=128)
    out = jax.block_until_ready(out)

    ref = unet_down_ref(x, weight)
    assert out.shape == (N, COUT, H // 2, W // 2)
    max_err = float(jnp.max(jnp.abs(out - ref)))
    # bf16 matmul operands + bf16 pre-norm stash -> loosened tolerance.
    assert jnp.allclose(out, ref, atol=5e-2, rtol=5e-2), (
        f"mismatch vs reference (max |err| = {max_err})")

    print("KERNEL_OK")
</pallas_src>

<mosaic_0001>
module attributes {stable_mosaic.version = 11 : i64} {
  func.func @unet_down_kernel(%arg0: i32, %arg1: i32, %arg2: i32, %arg3: memref<1x64x128xbf16, #tpu.memory_space<vmem>>, %arg4: memref<16x64xbf16, #tpu.memory_space<vmem>>, %arg5: memref<1x8x128xf32, #tpu.memory_space<vmem>>, %arg6: memref<2x16x128xbf16, #tpu.memory_space<vmem>>, %arg7: memref<16x1xf32, #tpu.memory_space<vmem>>, %arg8: memref<16x1xf32, #tpu.memory_space<vmem>>) attributes {dimension_semantics = [#tpu.dimension_semantics<parallel>, #tpu.dimension_semantics<arbitrary>, #tpu.dimension_semantics<arbitrary>], iteration_bounds = array<i64: 2, 2, 2>, scalar_prefetch = 0 : i64, scratch_operands = 3 : i64, tpu.core_type = #tpu.core_type<tc>, window_params = [{transform_indices = @transform_0, window_bounds = array<i64: 1, 64, 128>}, {pipeline_mode = #tpu.pipeline_mode<synchronous>, transform_indices = @transform_1, window_bounds = array<i64: 16, 64>}, {transform_indices = @transform_2, window_bounds = array<i64: 1, 8, 128>}]} {
    %c0_i32 = arith.constant 0 : i32
    %0 = arith.cmpi eq, %arg1, %c0_i32 : i32
    %c0_i32_0 = arith.constant 0 : i32
    %1 = arith.cmpi eq, %arg2, %c0_i32_0 : i32
    %2 = arith.andi %0, %1 : i1
    %3 = arith.extui %2 : i1 to i32
    %c0_i32_1 = arith.constant 0 : i32
    %4 = arith.cmpi ne, %3, %c0_i32_1 : i32
    scf.if %4 {
      %cst = arith.constant 0.000000e+00 : f32
      %11 = vector.broadcast %cst : f32 to vector<16x1xf32>
      %c0 = arith.constant 0 : index
      %c0_5 = arith.constant 0 : index
      %12 = vector.load %arg7[%c0, %c0_5] : memref<16x1xf32, #tpu.memory_space<vmem>>, vector<16x1xf32>
      tpu.vector_store %arg7[%c0, %c0_5], %11 {strides = array<i32>} : memref<16x1xf32, #tpu.memory_space<vmem>>, vector<16x1xf32>,
      %cst_6 = arith.constant 0.000000e+00 : f32
      %13 = vector.broadcast %cst_6 : f32 to vector<16x1xf32>
      %c0_7 = arith.constant 0 : index
      %c0_8 = arith.constant 0 : index
      %14 = vector.load %arg8[%c0_7, %c0_8] : memref<16x1xf32, #tpu.memory_space<vmem>>, vector<16x1xf32>
      tpu.vector_store %arg8[%c0_7, %c0_8], %13 {strides = array<i32>} : memref<16x1xf32, #tpu.memory_space<vmem>>, vector<16x1xf32>,
    } else {
    }
    %c0_i32_2 = arith.constant 0 : i32
    %5 = arith.cmpi eq, %arg1, %c0_i32_2 : i32
    %6 = arith.extui %5 : i1 to i32
    %c0_i32_3 = arith.constant 0 : i32
    %7 = arith.cmpi ne, %6, %c0_i32_3 : i32
    scf.if %7 {
      %c0 = arith.constant 0 : index
      %c0_5 = arith.constant 0 : index
      %11 = vector.load %arg4[%c0, %c0_5] : memref<16x64xbf16, #tpu.memory_space<vmem>>, vector<16x64xbf16>
      %c0_6 = arith.constant 0 : index
      %c0_7 = arith.constant 0 : index
      %c0_8 = arith.constant 0 : index
      %12 = vector.load %arg3[%c0_6, %c0_7, %c0_8] : memref<1x64x128xbf16, #tpu.memory_space<vmem>>, vector<1x64x128xbf16>
      %13 = vector.shape_cast %12 : vector<1x64x128xbf16> to vector<64x128xbf16>
      %cst = arith.constant dense<0.000000e+00> : vector<16x128xf32>
      %14 = tpu.matmul %11, %13, %cst {dimension_numbers = #tpu.dot_dimension_numbers<[1], [0], [0], [1], [0, 0, 1, 1], [], []>} : vector<16x64xbf16>, vector<64x128xbf16>, vector<16x128xf32> -> vector<16x128xf32>
      %c0_9 = arith.constant 0 : index
      %c0_10 = arith.constant 0 : index
      %15 = vector.load %arg7[%c0_9, %c0_10] : memref<16x1xf32, #tpu.memory_space<vmem>>, vector<16x1xf32>
      %cst_11 = arith.constant dense<0.000000e+00> : vector<16xf32>
      %16 = vector.multi_reduction <add>, %14, %cst_11 [1] : vector<16x128xf32> to vector<16xf32>
      %17 = vector.shape_cast %16 : vector<16xf32> to vector<16x1xf32>
      %18 = arith.addf %15, %17 : vector<16x1xf32>
      %c0_12 = arith.constant 0 : index
      %c0_13 = arith.constant 0 : index
      %19 = vector.load %arg7[%c0_12, %c0_13] : memref<16x1xf32, #tpu.memory_space<vmem>>, vector<16x1xf32>
      tpu.vector_store %arg7[%c0_12, %c0_13], %18 {strides = array<i32>} : memref<16x1xf32, #tpu.memory_space<vmem>>, vector<16x1xf32>,
      %c0_14 = arith.constant 0 : index
      %c0_15 = arith.constant 0 : index
      %20 = vector.load %arg8[%c0_14, %c0_15] : memref<16x1xf32, #tpu.memory_space<vmem>>, vector<16x1xf32>
      %21 = arith.mulf %14, %14 : vector<16x128xf32>
      %cst_16 = arith.constant dense<0.000000e+00> : vector<16xf32>
      %22 = vector.multi_reduction <add>, %21, %cst_16 [1] : vector<16x128xf32> to vector<16xf32>
      %23 = vector.shape_cast %22 : vector<16xf32> to vector<16x1xf32>
      %24 = arith.addf %20, %23 : vector<16x1xf32>
      %c0_17 = arith.constant 0 : index
      %c0_18 = arith.constant 0 : index
      %25 = vector.load %arg8[%c0_17, %c0_18] : memref<16x1xf32, #tpu.memory_space<vmem>>, vector<16x1xf32>
      tpu.vector_store %arg8[%c0_17, %c0_18], %24 {strides = array<i32>} : memref<16x1xf32, #tpu.memory_space<vmem>>, vector<16x1xf32>,
      %26 = arith.truncf %14 : vector<16x128xf32> to vector<16x128xbf16>
      %27 = arith.index_cast %arg2 : i32 to index
      %c0_19 = arith.constant 0 : index
      %c0_20 = arith.constant 0 : index
      %28 = vector.load %arg6[%27, %c0_19, %c0_20] : memref<2x16x128xbf16, #tpu.memory_space<vmem>>, vector<1x16x128xbf16>
      %29 = vector.shape_cast %28 : vector<1x16x128xbf16> to vector<16x128xbf16>
      %30 = vector.shape_cast %26 : vector<16x128xbf16> to vector<1x16x128xbf16>
      tpu.vector_store %arg6[%27, %c0_19, %c0_20], %30 {strides = array<i32>} : memref<2x16x128xbf16, #tpu.memory_space<vmem>>, vector<1x16x128xbf16>,
    } else {
    }
    %c1_i32 = arith.constant 1 : i32
    %8 = arith.cmpi eq, %arg1, %c1_i32 : i32
    %9 = arith.extui %8 : i1 to i32
    %c0_i32_4 = arith.constant 0 : i32
    %10 = arith.cmpi ne, %9, %c0_i32_4 : i32
    scf.if %10 {
      %c0 = arith.constant 0 : index
      %c0_5 = arith.constant 0 : index
      %11 = vector.load %arg7[%c0, %c0_5] : memref<16x1xf32, #tpu.memory_space<vmem>>, vector<16x1xf32>
      %cst = arith.constant 3.906250e-03 : f32
      %12 = vector.broadcast %cst : f32 to vector<16x1xf32>
      %13 = arith.mulf %11, %12 : vector<16x1xf32>
      %c0_6 = arith.constant 0 : index
      %c0_7 = arith.constant 0 : index
      %14 = vector.load %arg8[%c0_6, %c0_7] : memref<16x1xf32, #tpu.memory_space<vmem>>, vector<16x1xf32>
      %cst_8 = arith.constant 3.906250e-03 : f32
      %15 = vector.broadcast %cst_8 : f32 to vector<16x1xf32>
      %16 = arith.mulf %14, %15 : vector<16x1xf32>
      %17 = arith.mulf %13, %13 : vector<16x1xf32>
      %18 = arith.subf %16, %17 : vector<16x1xf32>
      %cst_9 = arith.constant 0.000000e+00 : f32
      %19 = vector.broadcast %cst_9 : f32 to vector<16x1xf32>
      %20 = arith.maximumf %18, %19 : vector<16x1xf32>
      %cst_10 = arith.constant 9.99999974E-6 : f32
      %21 = vector.broadcast %cst_10 : f32 to vector<16x1xf32>
      %22 = arith.addf %20, %21 : vector<16x1xf32>
      %23 = math.rsqrt %22 : vector<16x1xf32>
      %24 = arith.index_cast %arg2 : i32 to index
      %c0_11 = arith.constant 0 : index
      %c0_12 = arith.constant 0 : index
      %25 = vector.load %arg6[%24, %c0_11, %c0_12] : memref<2x16x128xbf16, #tpu.memory_space<vmem>>, vector<1x16x128xbf16>
      %26 = vector.shape_cast %25 : vector<1x16x128xbf16> to vector<16x128xbf16>
      %27 = arith.extf %26 : vector<16x128xbf16> to vector<16x128xf32>
      %28 = vector.broadcast %13 : vector<16x1xf32> to vector<16x128xf32>
      %29 = arith.subf %27, %28 : vector<16x128xf32>
      %30 = vector.broadcast %23 : vector<16x1xf32> to vector<16x128xf32>
      %31 = arith.mulf %29, %30 : vector<16x128xf32>
      %cst_13 = arith.constant 0.000000e+00 : f32
      %32 = vector.broadcast %cst_13 : f32 to vector<16x128xf32>
      %33 = arith.cmpf oge, %31, %32 : vector<16x128xf32>
      %cst_14 = arith.constant 2.000000e-01 : f32
      %34 = vector.broadcast %cst_14 : f32 to vector<16x128xf32>
      %35 = arith.mulf %34, %31 : vector<16x128xf32>
      %36 = arith.select %33, %31, %35 : vector<16x128xi1>, vector<16x128xf32>
      %37 = vector.extract_strided_slice %36 {offsets = [0, 0], sizes = [8, 128], strides = [1, 1]} : vector<16x128xf32> to vector<8x128xf32>
      %c0_15 = arith.constant 0 : index
      %c0_16 = arith.constant 0 : index
      %c0_17 = arith.constant 0 : index
      %38 = vector.load %arg5[%c0_15, %c0_16, %c0_17] : memref<1x8x128xf32, #tpu.memory_space<vmem>>, vector<1x8x128xf32>
      %39 = vector.shape_cast %38 : vector<1x8x128xf32> to vector<8x128xf32>
      %40 = vector.shape_cast %37 : vector<8x128xf32> to vector<1x8x128xf32>
      tpu.vector_store %arg5[%c0_15, %c0_16, %c0_17], %40 {strides = array<i32>} : memref<1x8x128xf32, #tpu.memory_space<vmem>>, vector<1x8x128xf32>,
    } else {
    }
    return
  }
  func.func @transform_0(%arg0: i32, %arg1: i32, %arg2: i32) -> (i32, i32, i32) {
    %c1_i32 = arith.constant 1 : i32
    %0 = arith.subi %c1_i32, %arg1 : i32
    %1 = arith.muli %arg2, %0 : i32
    %c1_i32_0 = arith.constant 1 : i32
    %2 = arith.muli %arg1, %c1_i32_0 : i32
    %3 = arith.addi %1, %2 : i32
    %c0_i32 = arith.constant 0 : i32
    %c0_i32_1 = arith.constant 0 : i32
    return %arg0, %c0_i32, %3 : i32, i32, i32
  }
  func.func @transform_1(%arg0: i32, %arg1: i32, %arg2: i32) -> (i32, i32) {
    %c0_i32 = arith.constant 0 : i32
    %c0_i32_0 = arith.constant 0 : i32
    %c0_i32_1 = arith.constant 0 : i32
    return %c0_i32, %c0_i32_0 : i32, i32
  }
  func.func @transform_2(%arg0: i32, %arg1: i32, %arg2: i32) -> (i32, i32, i32) {
    %0 = arith.muli %arg2, %arg1 : i32
    %c0_i32 = arith.constant 0 : i32
    %c0_i32_0 = arith.constant 0 : i32
    return %arg0, %c0_i32, %0 : i32, i32, i32
  }
}

</mosaic_0001>

<bundles_post_ra>
// kernel: tpu_custom_call.1
= control target key start
LH: loop header
LB: loop body
LE: loop exit
PB: predicated region body
PF: predicated region fallthrough
CT: control target
= control target key end

     0   :  { %s1154_s0 = inlined_call_operand.hbm [shape: bf16[2,64,256], index: 0, kind: input, shape index: {}]   ;;  %s1155_s1 = inlined_call_operand.hbm [shape: bf16[16,64], index: 1, kind: input, shape index: {}]   ;;  %s1156_s2 = inlined_call_operand.hbm [shape: f32[2,8,256], index: 2, kind: output, shape index: {}]  }
   0x1   :  { %1171 = sst [smem:[#allocation25_spill]] %s1155_s1 }
   0x2   :  { %1172 = sst [smem:[#allocation26_spill]] %s1156_s2 }
   0x3   :  { %7 = vsyncpa [#allocation6], 0 }
   0x4   :  { %9 = vsyncpa [#allocation6 + $0x1], 0 }
   0x5   :  { %10 = vsyncpa [#allocation9], 0 }
   0x6   :  { %11 = vsyncpa [#allocation7], 0 }
   0x7   :  { %13 = vsyncpa [#allocation7 + $0x1], 0  ;;  %s908_s9 = smov 0   ;;  %s910_s10 = smov 0  }
   0x8   :  { %s912_s11 = smov 0   ;;  %s914_s12 = smov 0  }
   0x9   :  { %s916_s13 = smov 0   ;;  %s918_s14 = smov 0  }
   0xa   :  { %s920_s15 = smov 0   ;;  %s922_s16 = smov 0  }
   0xb   :  { %s924_s17 = smov 0   ;;  %s926_s18 = smov 0  }
   0xc   :  { %s928_s19 = smov 0   ;;  %s930_s20 = smov 0  }
   0xd   :  { %s932_s21 = smov 0  }
   0xe LB: > { %1173 = sst [smem:[#allocation14_spill]] %s837_s9  ;;  %s490_s22 = sadd.s32 4294967295, %s885_s21   ;;  %s885_s21 = sphi %s932_s21, %s19_s21   ;;  %s881_s20 = sphi %s930_s20, %s1222_s20   ;;  %s877_s19 = sphi %s928_s19, %s1221_s19   ;;  %s873_s18 = sphi %s926_s18, %s1213_s18   ;;  %s869_s17 = sphi %s924_s17, %s1220_s17   ;;  %s865_s16 = sphi %s922_s16, %s1212_s16   ;;  %s861_s15 = sphi %s920_s15, %s1211_s15   ;;  %s857_s14 = sphi %s918_s14, %s1219_s14   ;;  %s853_s13 = sphi %s916_s13, %s1218_s13   ;;  %s849_s12 = sphi %s914_s12, %s1217_s12   ;;  %s845_s11 = sphi %s912_s11, %s1216_s11   ;;  %s841_s10 = sphi %s910_s10, %s1215_s10   ;;  %s837_s9 = sphi %s908_s9, %s1210_s9  }
   0xf   : > { %1174 = sst [smem:[#allocation15_spill]] %s841_s10  ;;  %s491_s23 = sadd.s32 4294967294, %s885_s21  }
  0x10   : > { %1175 = sst [smem:[#allocation16_spill]] %s861_s15  ;;  %p66_p0 = scmp.ne.s32.totalorder %s853_s13, %s849_s12 }
  0x11   : > { %1176 = sst [smem:[#allocation17_spill]] %s865_s16  ;;  %p974_p1 = scmp.eq.s32.totalorder %s490_s22, 0 }
  0x12   : > { %1177 = sst [smem:[#allocation18_spill]] %s869_s17  ;;  %p114_p2 = scmp.ne.s32.totalorder %s845_s11, %s841_s10 }
  0x13   : > { %1178 = sst [smem:[#allocation19_spill]] %s873_s18  ;;  %p115_p3 = scmp.eq.s32.totalorder %s490_s22, 7 }
  0x14   : > { %1179 = sst [smem:[#allocation20_spill]] %s877_s19  ;;  %p982_p4 = por %p974_p1, %p66_p0 }
  0x15   : > { %s1180_s24 = scalar_select %p974_p1, 1, 0 }
  0x16   : > { %p120_p5 = scmp.ne.s32.totalorder %s841_s10, %s837_s9  ;;  %p988_p6 = por %p115_p3, %p114_p2 }
  0x17   : > { %1181 = sst [smem:[#allocation21_spill]] %s1180_s24  ;;  %p121_p7 = scmp.eq.s32.totalorder %s491_s23, 7 }
  0x18   : > { %s1183_s26 = scalar_select %p988_p6, 1, 0 }
  0x19   : > { %p492_p8 = scmp.ge.s32.totalorder %s885_s21, 1  ;;  %p128_p9 = scmp.lt.s32.totalorder %s885_s21, 9 }
  0x1a   : > { %1184 = sst [smem:[#allocation22_spill]] %s1183_s26  ;;  %p994_p10 = por %p121_p7, %p120_p5 }
  0x1b   : > { %p998_p11 = pnand %p492_p8, %p128_p9  ;;  %s1188_s1 = sld [smem:[#allocation25_spill]] }
  0x1c   : > { %s1185_s27 = scalar_select %p994_p10, 1, 0 }
  0x1d   : > { %p554_p12 = pneg %p998_p11  ;;  %s887_s4 = smov [#allocation8]  }
  0x1e   : > { %1186 = sst [smem:[#allocation23_spill]] %s1185_s27  ;;  %s141_s5 = sshll.u32 %s887_s4, 4  ;;  %s142_s5 = int_to_ptr.vmem [resolvable:$true] %s141_s5 }
  0x1f   : > { %p555_p13 = pnand %p554_p12, %p974_p1  ;;  %s1157_s6 = smov 64  }
  0x20   : > { %s1158_s7 = smov 4   ;;  %s31_s8 = sadd.s32 1, %s873_s18 }
  0x21   : > { %s139_s3 = sshll.u32 %s1188_s1, 4  ;;  %s34_s12 = sadd.s32 1, %s877_s19  ;;  %s140_s3 = int_to_ptr.hbm [resolvable:$true] %s139_s3 }
  0x22   : > { %557 = dma.hbm_to_vmem [thread:$0]  (!%p555_p13), %s140_s3, 128, %s142_s5, [#allocation9], %s1157_s6, %s1157_s6, %s1158_s7  }
  0x23   : > { %p32_p0 = scmp.ge.s32.totalorder %s31_s8, 2  ;;  %s38_s22 = sadd.s32 1, %s881_s20 }
  0x24   : > { %s42_s23 = ssub.s32 1, %s877_s19  ;;  %s53_s29 = sadd.s32 1, %s857_s14 }
  0x25   : > { %s1224_s8 = smov (%p32_p0, %s31_s8), 0  ;;  %s1226_s12 = smov (!%p32_p0, %s34_s12), %s877_s19 }
  0x26   : > { %1189 = sst [smem:[#allocation24_spill]] %s1224_s8  ;;  %s43_s30 = smul.u32 %s873_s18, %s42_s23 }
  0x27   : > { %p60_p2 = scmp.ne.s32.totalorder %s857_s14, %s853_s13  ;;  %p36_p3 = scmp.ge.s32.totalorder %s1226_s12, 2 }
  0x28   : > { %p61_p5 = scmp.eq.s32.totalorder %s885_s21, 0  ;;  %s44_s4 = sadd.s32 %s877_s19, %s43_s30 }
  0x29   : > { %s97_s3 = smul.u32 %s873_s18, %s877_s19  ;;  %s1228_s12 = smov (%p36_p3, %s1226_s12), 0 }
  0x2a   : > { %s1230_s22 = smov (!%p36_p3, %s38_s22), %s881_s20  ;;  %s45_s5 = ssub.s32 1, %s1228_s12 }
  0x2b   : > { %p1031_p7 = por %p61_p5, %p60_p2  ;;  %p40_p8 = scmp.ge.s32.totalorder %s1230_s22, 2 }
  0x2c   : > { %s46_s23 = smul.u32 %s45_s5, %s1224_s8  ;;  %s104_s30 = sadd.s32 1, %s845_s11 }
  0x2d   : > { %s98_s7 = smul.u32 %s1228_s12, %s1224_s8  ;;  %s1232_s22 = smov (%p40_p8, %s1230_s22), 0 }
  0x2e   : > { %s47_s1 = sadd.s32 %s46_s23, %s1228_s12  ;;  %s48_s18 = ssub.s32 %s881_s20, %s1232_s22 }
  0x2f   : > { %s100_s19 = ssub.s32 %s97_s3, %s98_s7  ;;  %s49_s27 = ssub.s32 %s44_s4, %s47_s1 }
  0x30   : > { %s50_s9 = sor.u32 %s49_s27, %s48_s18  ;;  %s101_s2 = sor.u32 %s100_s19, %s48_s18 }
  0x31   : > { %p51_p9 = scmp.eq.s32.totalorder %s50_s9, 0  ;;  %p102_p12 = scmp.eq.s32.totalorder %s101_s2, 0 }
  0x32   : > { %p567_p13 = scmp.lt.s32.totalorder %s885_s21, 8  ;;  %s155_s26 = sand.u32 1, %s857_s14  }
  0x33   : > { %s1047_s17 = scalar_select %p51_p9, %s857_s14, %s53_s29  }
  0x34   : > { %s1050_s5 = scalar_select %p102_p12, %s845_s11, %s104_s30  }
  0x35   : > { %s495_s8 = sshll.u32 %s155_s26, 5  ;;  %s496_s15 = sshll.u32 %s881_s20, 4 }
  0x36   : > { %s166_s16 = sadd.s32 %s496_s15, %s44_s4  ;;  %s159_s10 = scalar_lea.vmem [#allocation5], %s495_s8 }
  0x37   : > { %s171_s24 = sshll.u32 %s159_s10, 4  ;;  %s497_s23 = sshll.u32 %s166_s16, 2  ;;  %s172_s24 = int_to_ptr.vmem [resolvable:$true] %s171_s24 }
  0x38   : > { %s168_s27 = scalar_lea.hbm %s1154_s0, %s497_s23  ;;  %p559_p0 = pnand %p567_p13, %p1031_p7 }
  0x39   : > { %s169_s2 = sshll.u32 %s168_s27, 4  ;;  %s156_s9 = scalar_lea.sflag [#allocation6], %s155_s26  ;;  %s170_s2 = int_to_ptr.hbm [resolvable:$true] %s169_s2 }
  0x3a   : > { %s890_s18 = smov 128   ;;  %s1191_s19 = smov 4  }
  0x3b   : > { %s1192_s29 = smov 64   ;;  %183 = sbr.rel (%p998_p11) target bundleno = 561 (0x231), region = 28 }
  0x3c   : > { %561 = dma.hbm_to_vmem [thread:$0]  (!%p559_p0), %s170_s2, 512, %s172_s24, %s156_s9, %s890_s18, %s1192_s29, %s1191_s19  }
  0x3d   : > { %s185_s10 = sand.u32 (!%p998_p11), 1, %s853_s13  }
  0x3e   : > { %s499_s15 = sshll.u32 (!%p998_p11), %s185_s10, 5  ;;  %s186_s16 = scalar_lea.sflag (!%p998_p11), [#allocation6], %s185_s10 }
  0x3f   : > { %s189_s8 = scalar_lea.vmem (!%p998_p11), [#allocation5], %s499_s15 }
  0x40   : > { %824 = dma.done.wait (%p982_p4), %s186_s16, 512  }
  0x41   : > { %826 = vsyncadd (%p982_p4), %s186_s16, 4294966784 }
  0x42   : > { %828 = dma.done.wait (%p974_p1), [#allocation9], 128  }
  0x43   : > { %830 = vsyncadd (%p974_p1), [#allocation9], 4294967168  ;;  %s1194_s24 = sld [smem:[#allocation15_spill]] }
  0x44   : > { %s1195_s26 = sld [smem:[#allocation17_spill]] }
  0x45   : > { %s1196_s28 = sld [smem:[#allocation16_spill]] }
  0x49   : > { %s213_s4 = sand.u32 1, %s1194_s24  }
  0x4a   : > { %p221_p11 = scmp.eq.s32.totalorder %s1195_s26, 0  ;;  %s1075_s3 = sshll.u32 %s213_s4, 3 }
  0x4b   : > { %p222_p2 = scmp.eq.s32.totalorder %s1196_s28, 0  ;;  %s215_s25 = scalar_lea.vmem [#allocation10], %s1075_s3 }
  0x4d   : > { %p223_p3 = pnand %p222_p2, %p221_p11 }
  0x4f   : > { %226 = sbr.rel (%p223_p3) target bundleno = 89 (0x59), region = 40 }
  0x54   : > { %vm227_vm0 = vcmask 7168   ;;  %v891_v0 = vmov 0.0  }
  0x55   : > { %228 = vst.msk [vmem:[#allocation3] sm:$0xff] %vm227_vm0, %v891_v0 }
  0x56   : > { %229 = vst.msk [vmem:[#allocation3 + $0x8] sm:$0xff] %vm227_vm0, %v891_v0 }
  0x57   : > { %230 = vst.msk [vmem:[#allocation4] sm:$0xff] %vm227_vm0, %v891_v0 }
  0x58   : > { %231 = vst.msk [vmem:[#allocation4 + $0x8] sm:$0xff] %vm227_vm0, %v891_v0 }
  0x59 PF: > { %s1197_s30 = sld [smem:[#allocation17_spill]] }
  0x5f   : > { %p502_p1 = scmp.ne.s32.totalorder %s1197_s30, 0 }
  0x60   : > { %s1198_s23 = sld [smem:[#allocation16_spill]] (!%p502_p1) }
  0x61   : > { %234 = sbr.rel (%p502_p1) target bundleno = 373 (0x175), region = 44 }
  0x66   : > { %v538_v1 = vld [vmem:[%s189_s8 + $0x18] sm:$0xff]  ;;  %v537_v2 = vld [vmem:[%s189_s8 + $0x10] sm:$0xff]  ;;  %v536_v3 = vld [vmem:[%s189_s8 + $0x8] sm:$0xff]  ;;  %vm274_vm1 = vcmask 523264   ;;  %s539_s7 = sshll.u32 %s1198_s23, 3  ;;  %vm300_vm2 = vcmask 7168  }
  0x67   : > { %282 = vmatpush.bf16.msra.mxu0 %v538_v1  ;;  %v535_v4 = vld [vmem:[%s189_s8] sm:$0xff]  ;;  %s319_s1 = scalar_lea.vmem [#allocation2], %s539_s7  ;;  %v303_v13 = vld [vmem:[#allocation4] sm:$0xff]  ;;  %v293_v17 = vld [vmem:[#allocation3 + $0x8] sm:$0xff] }
  0x68   : > { %v534_v5 = vld [vmem:[#allocation8] sm:$0xff]  ;;  %v304_v19 = vld [vmem:[#allocation4 + $0x8] sm:$0xff] }
  0x69   : > { %v292_v11 = vld [vmem:[#allocation3] sm:$0xff] }
  0x6b   : > { %283 = vmatpush.bf16.msra.mxu0 %v537_v2 }
  0x6f   : > { %284 = vmatpush.bf16.msra.mxu0 %v536_v3 }
  0x73   : > { %285 = vmatpush.bf16.msra.mxu0 %v535_v4 }
  0x76   : > { %523 = vmatmul.msk.bf16.vlgmr.msra.gmra.mxu0 %vm274_vm1, %v534_v5 }
  0xf3   : > { %v287_v6 = vpop.f32.mrf.mxu0 }
  0xf4   : > { %294 = vadd.xlane.f32.xlu0 %v287_v6  ;;  %v305_v7 = vmul.f32 %v287_v6, %v287_v6 }
  0xf6   : > { %307 = vadd.xlane.f32.xlu1 %v305_v7 }
  0xfb   : > { %v289_v8 = vpop.f32.mrf.mxu0 }
  0xfc   : > { %v544_v9 = vpack.c.bf16 %v289_v8, %v287_v6  ;;  %296 = vadd.xlane.f32.xlu0 %v289_v8  ;;  %v306_v10 = vmul.f32 %v289_v8, %v289_v8 }
  0xfe   : > { %545 = vst [vmem:[%s319_s1] sm:$0xff] %v544_v9   ;;  %309 = vadd.xlane.f32.xlu1 %v306_v10 }
 0x167   : > { %v295_v12 = vpop.xlane.xlu0 %294 }
 0x168   : > { %v298_v14 = vadd.f32 %v295_v12, %v292_v11 }
 0x169   : > { %v308_v15 = vpop.xlane.xlu1 %307 }
 0x16a   : > { %301 = vst.msk [vmem:[#allocation3] sm:$0xff] %vm300_vm2, %v298_v14  ;;  %v311_v16 = vadd.f32 %v308_v15, %v303_v13 }
 0x16c   : > { %313 = vst.msk [vmem:[#allocation4] sm:$0xff] %vm300_vm2, %v311_v16 }
 0x16f   : > { %v297_v18 = vpop.xlane.xlu0 %296 }
 0x170   : > { %v299_v20 = vadd.f32 %v297_v18, %v293_v17 }
 0x171   : > { %v310_v21 = vpop.xlane.xlu1 %309 }
 0x172   : > { %302 = vst.msk [vmem:[#allocation3 + $0x8] sm:$0xff] %vm300_vm2, %v299_v20  ;;  %v312_v22 = vadd.f32 %v310_v21, %v304_v19 }
 0x174   : > { %314 = vst.msk [vmem:[#allocation4 + $0x8] sm:$0xff] %vm300_vm2, %v312_v22 }
 0x175 PF: > { %s1199_s27 = sld [smem:[#allocation17_spill]] }
 0x17b   : > { %p526_p4 = scmp.ne.s32.totalorder %s1199_s27, 1 }
 0x17c   : > { %s1200_s2 = sld [smem:[#allocation16_spill]] (!%p526_p4) }
 0x17d   : > { %325 = sbr.rel (%p526_p4) target bundleno = 536 (0x218), region = 48 }
 0x182   : > { %v326_v23 = vld [vmem:[#allocation3] sm:$0xff]  ;;  %v328_v24 = vld [vmem:[#allocation4] sm:$0xff]  ;;  %v892_v25 = vmov 0   ;;  %s540_s9 = sshll.u32 %s1200_s2, 3 }
 0x183   : > { %680 = vset.pattern.permute.xlu0 %v892_v25  ;;  %v327_v26 = vmul.f32 0.00390625, %v326_v23  ;;  %v329_v27 = vmul.f32 0.00390625, %v328_v24  ;;  %s346_s18 = scalar_lea.vmem [#allocation2], %s540_s9 }
 0x184   : > { %v347_v40 = vld [vmem:[%s346_s18] sm:$0xf] }
 0x185   : > { %351 = vperm.xlu0 %680, %v327_v26   ;;  %v330_v28 = vmul.f32 %v327_v26, %v327_v26  ;;  %v348_v41 = vunpack.c.l.bf16 %v347_v40 }
 0x187   : > { %v331_v29 = vsub.f32 %v329_v27, %v330_v28 }
 0x189   : > { %v332_v30 = vmax.f32 %v331_v29, 0.0 }
 0x18b   : > { %v333_v31 = vadd.f32 1e-05, %v332_v30 }
 0x18d   : > { %681 = vrsqrt.f32 %v333_v31  ;;  %vm340_vm3 = vweird.f32 %v333_v31 }
 0x193   : > { %v682_v32 = vpop.eup %681 }
 0x194   : > { %v335_v33 = vmul.f32 %v682_v32, %v333_v31  ;;  %vm341_vm4 = vweird.f32 %v682_v32 }
 0x195   : > { %vm342_vm5 = vmor %vm340_vm3, %vm341_vm4 }
 0x196   : > { %v336_v34 = vmul.f32 %v682_v32, %v335_v33 }
 0x198   : > { %v337_v35 = vmul.f32 0.5, %v336_v34 }
 0x19a   : > { %v338_v36 = vsub.f32 1.5, %v337_v35 }
 0x19c   : > { %v339_v37 = vmul.f32 %v682_v32, %v338_v36 }
 0x19e   : > { %v343_v38 = vsel %vm342_vm5, %v682_v32, %v339_v37 }
 0x19f   : > { %357 = vperm.xlu0 %680, %v343_v38  }
 0x1f7   : > { %v352_v39 = vpop.permute.xlu0 %351 }
 0x1f8   : > { %v354_v42 = vsub.f32 %v348_v41, %v352_v39 }
 0x211   : > { %v358_v43 = vpop.permute.xlu0 %357 }
 0x212   : > { %v360_v44 = vmul.f32 %v358_v43, %v354_v42 }
 0x214   : > { %vm361_vm6 = vcmp.ge.f32.partialorder %v360_v44, 0.0  ;;  %v362_v45 = vmul.f32 0.2, %v360_v44 }
 0x216   : > { %v363_v46 = vsel %vm361_vm6, %v360_v44, %v362_v45 }
 0x217   : > { %364 = vst [vmem:[%s215_s25] sm:$0xff] %v363_v46 }
 0x218 PF: > { %s1201_s19 = sld [smem:[#allocation17_spill]]  ;;  %s381_s24 = sshll.u32 %s215_s25, 4  ;;  %s382_s24 = int_to_ptr.vmem [resolvable:$true] %s381_s24 }
 0x219   : > { %s1202_s29 = sld [smem:[#allocation16_spill]]  ;;  %s366_s2 = scalar_lea.sflag [#allocation7], %s213_s4 }
 0x21a   : > { %s1203_s10 = sld [smem:[#allocation18_spill]] }
 0x21b   : > { %s1206_s7 = sld [smem:[#allocation26_spill]] }
 0x21f   : > { %s373_s8 = smul.u32 %s1202_s29, %s1201_s19 }
 0x220   : > { %s530_s6 = sshll.u32 %s1203_s10, 1 }
 0x221   : > { %s377_s26 = sadd.s32 %s530_s6, %s373_s8  ;;  %s763_s19 = scalar_lea.hbm %s1206_s7, 32 }
 0x222   : > { %s531_s28 = sshll.u32 %s377_s26, 3 }
 0x223   : > { %s379_s1 = scalar_lea.hbm %s1206_s7, %s531_s28 }
 0x224   : > { %s383_s27 = sshll.u32 %s379_s1, 4  ;;  %s384_s27 = int_to_ptr.hbm [resolvable:$true] %s383_s27 }
 0x225   : > { %s757_s9 = sshra.s32 %s384_s27, 4  ;;  %s758_s9 = int_to_ptr.hbm [resolvable:$true] %s757_s9 }
 0x226   : > { %s759_s18 = scalar_lea.hbm %s758_s9, 8  ;;  %p764_p9 = scmp.lt.s32.totalorder %s758_s9, %s1206_s7 }
 0x227   : > { %p760_p5 = scmp.ne.s32.totalorder %s758_s9, %s759_s18  ;;  %p765_p12 = scmp.lt.s32.totalorder %s763_s19, %s759_s18 }
 0x229   : > { %p761_p7 = pnand %p760_p5, %p988_p6  ;;  %p766_p13 = por %p765_p12, %p764_p9 }
 0x22b   : > { %p762_p8 = pneg %p761_p7 }
 0x22d   : > { %p767_p0 = pnand %p766_p13, %p762_p8 }
 0x22f   : > { %770 = shalt.err (!%p767_p0)
}
 0x230   : > { %552 = dma.vmem_to_hbm [thread:$0]  (%p988_p6), %s382_s24, 128, %s384_s27, %s366_s2  }
 0x231 PF: > { %s1207_s4 = sld [smem:[#allocation14_spill]]  ;;  %p569_p11 = scmp.ge.s32.totalorder %s885_s21, 2 }
 0x233   : > { %p563_p2 = pnand %p569_p11, %p994_p10 }
 0x235   : > { %p564_p3 = pneg %p563_p2 }
 0x237   : > { %s395_s8 = sand.u32 1, %s1207_s4  }
 0x238   : > { %s396_s6 = scalar_lea.sflag [#allocation7], %s395_s8 }
 0x239   : > { %832 = dma.done.wait (%p564_p3), %s396_s6, 128  }
 0x23a   : > { %834 = vsyncadd (%p564_p3), %s396_s6, 4294967168  ;;  %s19_s21 = sadd.s32 1, %s885_s21   ;;  %s1210_s9 = sld [smem:[#allocation15_spill]] }
 0x23b   : > { %p1110_p1 = scmp.ge.s32.totalorder %s19_s21, 10   ;;  %s1211_s15 = sld [smem:[#allocation19_spill]] }
 0x23c   : > { %s1212_s16 = sld [smem:[#allocation20_spill]]  ;;  %s1214_s24 = smov %s1228_s12 }
 0x23d   : > { %s1213_s18 = sld [smem:[#allocation24_spill]]  ;;  %s1215_s10 = smov %s845_s11 }
 0x23e   : > { %s1216_s11 = smov %s1050_s5  ;;  %s1217_s12 = smov %s853_s13 }
 0x23f   : > { %s1218_s13 = smov %s857_s14  ;;  %s1219_s14 = smov %s1047_s17 }
 0x240   : > { %s1220_s17 = smov %s881_s20  ;;  %s1221_s19 = smov %s1214_s24 }
 0x241   : > { %s1222_s20 = smov %s1232_s22  ;;  %18 = sbr.rel (!%p1110_p1) target bundleno = 14 (0xe), region = 91 }
 0x246   :  { %402 = vsyncpa [#allocation6], 1 }
 0x247   :  { %404 = vsyncpa [#allocation6 + $0x1], 1 }
 0x248   :  { %405 = vsyncpa [#allocation9], 1 }
 0x249   :  { %406 = vsyncpa [#allocation7], 1 }
 0x24a   :  { %408 = vsyncpa [#allocation7 + $0x1], 1 }

</bundles_post_ra>
